<compile_context>
chip_gen: v7x
topology: tpu7x:2x2x1
jax: 0.10.0
libtpu: 0.0.40
codegen_flags: <defaults>
</compile_context>

<pallas_src>
import functools
import math

import jax
import jax.numpy as jnp
from jax.experimental import pallas as pl
from jax.experimental.pallas import tpu as pltpu

LANE = 128
MAX_TILE_ROWS = 512  # 512x128 f32 tile = 256 KiB; safe for v7x 64 MiB VMEM w/ dbl-buffer


# ----------------------------------------------------------------------------- kernels
def _collect_batch_kernel(w_ref, mean_in_ref, sq_in_ref, mean_out_ref, sq_out_ref, *, n0):
    """Fused SWAG running-moment update over all snapshots for one parameter tile.

    Grid = (tiles, snapshots); mean/sq accumulators stay resident in the output block
    across the snapshot axis (accumulator pattern)."""
    s = pl.program_id(1)

    @pl.when(s == 0)
    def _():
        mean_out_ref[...] = mean_in_ref[...]
        sq_out_ref[...] = sq_in_ref[...]

    denom = (s + (n0 + 1)).astype(jnp.float32)   # n_models after this snapshot
    new_frac = 1.0 / denom
    old_frac = 1.0 - new_frac
    w = w_ref[0]
    mean_out_ref[...] = mean_out_ref[...] * old_frac + w * new_frac
    sq_out_ref[...] = sq_out_ref[...] * old_frac + (w * w) * new_frac


def _sample_kernel(eps_ref, cov_ref, mean_ref, sq_ref, noise_ref, out_ref,
                   *, rank, scale, var_clamp):
    """sample = mean + sqrt(scale) * (cov_factor^T @ eps + sqrt(var) * noise).

    variance = clamp(sq_mean - mean^2, var_clamp) is fused in (no separate pass).
    The rank contraction is an unrolled VPU broadcast-FMA (eps scalars from SMEM)."""
    m = mean_ref[...]
    var = jnp.maximum(sq_ref[...] - m * m, var_clamp)
    z = eps_ref[0] * cov_ref[0]
    for r in range(1, rank):
        z = z + eps_ref[r] * cov_ref[r]
    z = z + jnp.sqrt(var) * noise_ref[...]
    # TODO(synk): pad-tail lanes pick up sqrt(var_clamp)*noise; they are sliced off
    #             before set_weights, so the forward is unaffected.
    out_ref[...] = m + z * (scale ** 0.5)


def _mlp_kernel(x_ref, w1_ref, b1_ref, w2_ref, b2_ref, out_ref):
    """Base-model forward: relu(x @ W1 + b1) @ W2 + b2 (single VMEM block)."""
    h = jnp.dot(x_ref[...], w1_ref[...], preferred_element_type=jnp.float32) + b1_ref[...]
    h = jnp.maximum(h, 0.0)
    y = jnp.dot(h, w2_ref[...], preferred_element_type=jnp.float32) + b2_ref[...]
    out_ref[...] = y.astype(out_ref.dtype)


# ----------------------------------------------------------------------------- wrappers
def _plan_rows(num_params):
    """Pick a sublane-dense [rows, 128] layout and a row-tile size."""
    rows = -(-num_params // LANE)          # ceil
    rows = -(-rows // 8) * 8               # sublane multiple
    tile_rows = min(rows, MAX_TILE_ROWS)
    rows = -(-rows // tile_rows) * tile_rows
    return rows, tile_rows


def swag_collect_batch(ws, mean2d, sq2d, *, n_models_start, tile_rows):
    """collect_model() for a stack of snapshots in one launch; in-place moment update."""
    n_snap, rows, _ = ws.shape
    vec_spec = pl.BlockSpec((tile_rows, LANE), lambda i, s: (i, 0))
    w_spec = pl.BlockSpec((1, tile_rows, LANE), lambda i, s: (s, i, 0))
    kernel = functools.partial(_collect_batch_kernel, n0=int(n_models_start))
    return pl.pallas_call(
        kernel,
        grid=(rows // tile_rows, n_snap),
        in_specs=[w_spec, vec_spec, vec_spec],
        out_specs=(vec_spec, vec_spec),
        out_shape=(jax.ShapeDtypeStruct(mean2d.shape, jnp.float32),
                   jax.ShapeDtypeStruct(sq2d.shape, jnp.float32)),
        input_output_aliases={1: 0, 2: 1},      # mean/sq_mean updated in place
        compiler_params=pltpu.CompilerParams(
            dimension_semantics=("parallel", "arbitrary")),
    )(ws, mean2d, sq2d)


def swag_sample(mean2d, sq2d, cov_factor, eps, noise, *, scale, var_clamp, tile_rows):
    """sample(): low-rank + diagonal Gaussian draw; variance computed in-kernel."""
    rank, rows, _ = cov_factor.shape
    vec_spec = pl.BlockSpec((tile_rows, LANE), lambda i: (i, 0))
    cov_spec = pl.BlockSpec((rank, tile_rows, LANE), lambda i: (0, i, 0))
    eps_spec = pl.BlockSpec(memory_space=pltpu.MemorySpace.SMEM)
    kernel = functools.partial(_sample_kernel, rank=rank, scale=scale,
                               var_clamp=var_clamp)
    return pl.pallas_call(
        kernel,
        grid=(rows // tile_rows,),
        in_specs=[eps_spec, cov_spec, vec_spec, vec_spec, vec_spec],
        out_specs=vec_spec,
        out_shape=jax.ShapeDtypeStruct(mean2d.shape, jnp.float32),
        compiler_params=pltpu.CompilerParams(dimension_semantics=("parallel",)),
    )(eps, cov_factor, mean2d, sq2d, noise)


def base_model_forward(x, w1, b1, w2, b2):
    """Model.forward(x) -> base_model(x); padded to (8-sublane, 128-lane) output."""
    B, d_in = x.shape
    hid = w1.shape[1]
    d_out = w2.shape[1]
    b_pad = -(-B // 8) * 8
    d_out_pad = -(-d_out // LANE) * LANE
    x_p = jnp.zeros((b_pad, d_in), jnp.float32).at[:B].set(x.astype(jnp.float32))
    w2_p = jnp.zeros((hid, d_out_pad), jnp.float32).at[:, :d_out].set(w2)
    b2_p = jnp.zeros((1, d_out_pad), jnp.float32).at[0, :d_out].set(b2.reshape(-1))
    b1_p = b1.reshape(1, hid).astype(jnp.float32)
    y = pl.pallas_call(
        _mlp_kernel,
        out_shape=jax.ShapeDtypeStruct((b_pad, d_out_pad), jnp.float32),
    )(x_p, w1.astype(jnp.float32), b1_p, w2_p, b2_p)
    return y[:B, :d_out].astype(x.dtype)


# ----------------------------------------------------------------------------- glue (plain JAX)
def flatten_params(params):
    """torch `flatten([p for p in parameters])` analogue."""
    return jnp.concatenate([p.reshape(-1) for p in params])


def set_weights_from_vector(vec, shapes):
    """torch `set_weights` analogue: unflatten a vector into parameter tensors."""
    out, off = [], 0
    for shp in shapes:
        n = math.prod(shp)
        out.append(vec[off:off + n].reshape(shp))
        off += n
    return out


def pad_to_rows(v, rows):
    """Flat parameter vector -> sublane-dense [rows, 128] f32 layout."""
    flat = jnp.asarray(v, jnp.float32).reshape(-1)
    return jnp.pad(flat, (0, rows * LANE - flat.shape[0])).reshape(rows, LANE)


# ----------------------------------------------------------------------------- main
if __name__ == "__main__":
    key = jax.random.PRNGKey(0)
    B, D_IN, HID, D_OUT = 2, 32, 64, 16
    RANK = 8
    N_SNAP = 3
    VAR_CLAMP = 1e-6
    SCALE = 0.5

    shapes = [(D_IN, HID), (HID,), (HID, D_OUT), (D_OUT,)]
    P = sum(math.prod(s) for s in shapes)              # num_parameters
    ROWS, TILE_ROWS = _plan_rows(P)

    # ---- deterministic "base model" parameters + SWAG state ---------------------------
    k_params, k_pert, k_cov, k_eps, k_noise, k_x = jax.random.split(key, 6)
    base_params = [0.1 * jax.random.normal(k, s, dtype=jnp.float32)
                   for k, s in zip(jax.random.split(k_params, len(shapes)), shapes)]
    w_base = flatten_params(base_params)

    # three collect_model() snapshots, processed in ONE fused kernel launch
    perts = 0.01 * jax.random.normal(k_pert, (N_SNAP, P), dtype=jnp.float32)
    ws = jnp.stack([pad_to_rows(w_base + perts[t], ROWS) for t in range(N_SNAP)])

    mean = jnp.zeros((ROWS, LANE), jnp.float32)
    sq_mean = jnp.zeros((ROWS, LANE), jnp.float32)

    collect_jit = jax.jit(
        lambda w_, m_, s_: swag_collect_batch(
            w_, m_, s_, n_models_start=0, tile_rows=TILE_ROWS),
        donate_argnums=(1, 2))
    mean, sq_mean = collect_jit(ws, mean, sq_mean)
    n_models = N_SNAP

    # fit(): synthetic low-rank covariance factor standing in for subspace.get_space()
    cov_factor = 0.01 * jax.random.normal(k_cov, (RANK, ROWS, LANE), dtype=jnp.float32)

    # sample()  (variance = clamp(sq_mean - mean^2) fused into the kernel)
    eps = jax.random.normal(k_eps, (RANK,), dtype=jnp.float32)
    noise = jax.random.normal(k_noise, (ROWS, LANE), dtype=jnp.float32)
    sample2d = swag_sample(mean, sq_mean, cov_factor, eps, noise,
                           scale=SCALE, var_clamp=VAR_CLAMP, tile_rows=TILE_ROWS)

    # set_weights(base_model, sample) then forward(x)
    sample_vec = sample2d.reshape(-1)[:P]
    w1, b1, w2, b2 = set_weights_from_vector(sample_vec, shapes)
    x = jax.random.normal(k_x, (B, D_IN), dtype=jnp.float32)
    y = base_model_forward(x, w1, b1, w2, b2)
    y = jax.block_until_ready(y)

    # ---- pure-JAX reference checks -----------------------------------------------------
    ref_mean = jnp.mean(ws, axis=0)
    ref_sq = jnp.mean(ws * ws, axis=0)
    ref_var = jnp.maximum(ref_sq - ref_mean * ref_mean, VAR_CLAMP)
    ref_sample = ref_mean + (jnp.einsum("r,rab->ab", eps, cov_factor)
                             + jnp.sqrt(ref_var) * noise) * (SCALE ** 0.5)
    rp = set_weights_from_vector(ref_sample.reshape(-1)[:P], shapes)
    ref_y = jnp.maximum(x @ rp[0] + rp[1], 0.0) @ rp[2] + rp[3]

    assert jnp.allclose(mean, ref_mean, atol=1e-5), "mean mismatch"
    assert jnp.allclose(sq_mean, ref_sq, atol=1e-5), "sq_mean mismatch"
    assert jnp.allclose(sample2d, ref_sample, atol=1e-4), "sample mismatch"
    assert jnp.allclose(y, ref_y, atol=1e-3, rtol=1e-3), "forward mismatch"
    assert n_models == N_SNAP

    print("KERNEL_OK")
</pallas_src>

<mosaic_0001>
module attributes {stable_mosaic.version = 11 : i64} {
  func.func @_collect_batch_kernel(%arg0: i32, %arg1: i32, %arg2: memref<1x32x128xf32, #tpu.memory_space<vmem>>, %arg3: memref<32x128xf32, #tpu.memory_space<vmem>>, %arg4: memref<32x128xf32, #tpu.memory_space<vmem>>, %arg5: memref<32x128xf32, #tpu.memory_space<vmem>>, %arg6: memref<32x128xf32, #tpu.memory_space<vmem>>) attributes {dimension_semantics = [#tpu.dimension_semantics<parallel>, #tpu.dimension_semantics<arbitrary>], iteration_bounds = array<i64: 1, 3>, scalar_prefetch = 0 : i64, scratch_operands = 0 : i64, tpu.core_type = #tpu.core_type<tc>, window_params = [{transform_indices = @transform_0, window_bounds = array<i64: 1, 32, 128>}, {transform_indices = @transform_1, window_bounds = array<i64: 32, 128>}, {transform_indices = @transform_2, window_bounds = array<i64: 32, 128>}, {transform_indices = @transform_3, window_bounds = array<i64: 32, 128>}, {transform_indices = @transform_4, window_bounds = array<i64: 32, 128>}]} {
    %c0_i32 = arith.constant 0 : i32
    %0 = arith.cmpi eq, %arg1, %c0_i32 : i32
    %1 = arith.extui %0 : i1 to i32
    %c0_i32_0 = arith.constant 0 : i32
    %2 = arith.cmpi ne, %1, %c0_i32_0 : i32
    scf.if %2 {
      %c0_12 = arith.constant 0 : index
      %c0_13 = arith.constant 0 : index
      %24 = vector.load %arg3[%c0_12, %c0_13] : memref<32x128xf32, #tpu.memory_space<vmem>>, vector<32x128xf32>
      %c0_14 = arith.constant 0 : index
      %c0_15 = arith.constant 0 : index
      %25 = vector.load %arg5[%c0_14, %c0_15] : memref<32x128xf32, #tpu.memory_space<vmem>>, vector<32x128xf32>
      tpu.vector_store %arg5[%c0_14, %c0_15], %24 {strides = array<i32>} : memref<32x128xf32, #tpu.memory_space<vmem>>, vector<32x128xf32>,
      %c0_16 = arith.constant 0 : index
      %c0_17 = arith.constant 0 : index
      %26 = vector.load %arg4[%c0_16, %c0_17] : memref<32x128xf32, #tpu.memory_space<vmem>>, vector<32x128xf32>
      %c0_18 = arith.constant 0 : index
      %c0_19 = arith.constant 0 : index
      %27 = vector.load %arg6[%c0_18, %c0_19] : memref<32x128xf32, #tpu.memory_space<vmem>>, vector<32x128xf32>
      tpu.vector_store %arg6[%c0_18, %c0_19], %26 {strides = array<i32>} : memref<32x128xf32, #tpu.memory_space<vmem>>, vector<32x128xf32>,
    } else {
    }
    %c1_i32 = arith.constant 1 : i32
    %3 = arith.addi %arg1, %c1_i32 : i32
    %4 = arith.sitofp %3 : i32 to f32
    %cst = arith.constant 1.000000e+00 : f32
    %5 = arith.divf %cst, %4 : f32
    %cst_1 = arith.constant 1.000000e+00 : f32
    %6 = arith.subf %cst_1, %5 : f32
    %c0 = arith.constant 0 : index
    %c0_2 = arith.constant 0 : index
    %c0_3 = arith.constant 0 : index
    %7 = vector.load %arg2[%c0, %c0_2, %c0_3] : memref<1x32x128xf32, #tpu.memory_space<vmem>>, vector<1x32x128xf32>
    %8 = vector.shape_cast %7 : vector<1x32x128xf32> to vector<32x128xf32>
    %c0_4 = arith.constant 0 : index
    %c0_5 = arith.constant 0 : index
    %9 = vector.load %arg5[%c0_4, %c0_5] : memref<32x128xf32, #tpu.memory_space<vmem>>, vector<32x128xf32>
    %10 = vector.broadcast %6 : f32 to vector<32x128xf32>
    %11 = arith.mulf %9, %10 : vector<32x128xf32>
    %12 = vector.broadcast %5 : f32 to vector<32x128xf32>
    %13 = arith.mulf %8, %12 : vector<32x128xf32>
    %14 = arith.addf %11, %13 : vector<32x128xf32>
    %c0_6 = arith.constant 0 : index
    %c0_7 = arith.constant 0 : index
    %15 = vector.load %arg5[%c0_6, %c0_7] : memref<32x128xf32, #tpu.memory_space<vmem>>, vector<32x128xf32>
    tpu.vector_store %arg5[%c0_6, %c0_7], %14 {strides = array<i32>} : memref<32x128xf32, #tpu.memory_space<vmem>>, vector<32x128xf32>,
    %c0_8 = arith.constant 0 : index
    %c0_9 = arith.constant 0 : index
    %16 = vector.load %arg6[%c0_8, %c0_9] : memref<32x128xf32, #tpu.memory_space<vmem>>, vector<32x128xf32>
    %17 = vector.broadcast %6 : f32 to vector<32x128xf32>
    %18 = arith.mulf %16, %17 : vector<32x128xf32>
    %19 = arith.mulf %8, %8 : vector<32x128xf32>
    %20 = vector.broadcast %5 : f32 to vector<32x128xf32>
    %21 = arith.mulf %19, %20 : vector<32x128xf32>
    %22 = arith.addf %18, %21 : vector<32x128xf32>
    %c0_10 = arith.constant 0 : index
    %c0_11 = arith.constant 0 : index
    %23 = vector.load %arg6[%c0_10, %c0_11] : memref<32x128xf32, #tpu.memory_space<vmem>>, vector<32x128xf32>
    tpu.vector_store %arg6[%c0_10, %c0_11], %22 {strides = array<i32>} : memref<32x128xf32, #tpu.memory_space<vmem>>, vector<32x128xf32>,
    return
  }
  func.func @transform_0(%arg0: i32, %arg1: i32) -> (i32, i32, i32) {
    %c0_i32 = arith.constant 0 : i32
    %c0_i32_0 = arith.constant 0 : i32
    return %arg1, %arg0, %c0_i32 : i32, i32, i32
  }
  func.func @transform_1(%arg0: i32, %arg1: i32) -> (i32, i32) {
    %c0_i32 = arith.constant 0 : i32
    %c0_i32_0 = arith.constant 0 : i32
    return %arg0, %c0_i32 : i32, i32
  }
  func.func @transform_2(%arg0: i32, %arg1: i32) -> (i32, i32) {
    %c0_i32 = arith.constant 0 : i32
    %c0_i32_0 = arith.constant 0 : i32
    return %arg0, %c0_i32 : i32, i32
  }
  func.func @transform_3(%arg0: i32, %arg1: i32) -> (i32, i32) {
    %c0_i32 = arith.constant 0 : i32
    %c0_i32_0 = arith.constant 0 : i32
    return %arg0, %c0_i32 : i32, i32
  }
  func.func @transform_4(%arg0: i32, %arg1: i32) -> (i32, i32) {
    %c0_i32 = arith.constant 0 : i32
    %c0_i32_0 = arith.constant 0 : i32
    return %arg0, %c0_i32 : i32, i32
  }
}

</mosaic_0001>

<bundles_post_ra>
// kernel: _lambda_.1
= control target key start
LH: loop header
LB: loop body
LE: loop exit
PB: predicated region body
PF: predicated region fallthrough
CT: control target
= control target key end

     0   :  { %10 = vsyncpa [#allocation3], 0  ;;  %s1108_s0 = inlined_call_operand.hbm [shape: f32[3,32,128], index: 0, kind: input, shape index: {}]   ;;  %s1109_s1 = inlined_call_operand.hbm [shape: f32[32,128], index: 1, kind: input, shape index: {}, may-alias: {1,3}]   ;;  %s1110_s2 = inlined_call_operand.hbm [shape: f32[32,128], index: 2, kind: input, shape index: {}, may-alias: {2,4}]   ;;  %s1111_s3 = inlined_call_operand.hbm [shape: f32[32,128], index: 3, kind: output, shape index: {0}, may-alias: {1,3}]   ;;  %s1112_s4 = inlined_call_operand.hbm [shape: f32[32,128], index: 4, kind: output, shape index: {1}, may-alias: {2,4}]  }
   0x1   :  { %12 = vsyncpa [#allocation3 + $0x1], 0 }
   0x2   :  { %13 = vsyncpa [#allocation6], 0 }
   0x3   :  { %14 = vsyncpa [#allocation4], 0 }
   0x4   :  { %15 = vsyncpa [#allocation10], 0  ;;  %s837_s15 = smov 0   ;;  %s839_s16 = smov 0  }
   0x5   :  { %s841_s17 = smov 0   ;;  %s843_s18 = smov 0  }
   0x6   :  { %s845_s19 = smov 0   ;;  %s847_s20 = smov 0  }
   0x7 LB: > { %s483_s21 = sadd.s32 4294967295, %s801_s20   ;;  %p55_p0 = scmp.ne.s32.totalorder %s785_s16, %s781_s15  ;;  %s801_s20 = sphi %s847_s20, %s21_s20   ;;  %s797_s19 = sphi %s845_s19, %s1130_s19   ;;  %s793_s18 = sphi %s843_s18, %s1129_s18   ;;  %s789_s17 = sphi %s841_s17, %s1128_s17   ;;  %s785_s16 = sphi %s839_s16, %s1127_s16   ;;  %s781_s15 = sphi %s837_s15, %s1126_s15  }
   0x8   : > { %p869_p1 = scmp.eq.s32.totalorder %s483_s21, 0  ;;  %p484_p2 = scmp.ge.s32.totalorder %s801_s20, 1 }
   0x9   : > { %p170_p3 = scmp.lt.s32.totalorder %s801_s20, 4  ;;  %s803_s25 = smov [#allocation5]  }
   0xa   : > { %s1117_s22 = scalar_select %p869_p1, 1, 0 }
   0xb   : > { %p877_p4 = por %p869_p1, %p55_p0  ;;  %p881_p5 = pnand %p484_p2, %p170_p3 }
   0xc   : > { %s185_s26 = sshll.u32 %s803_s25, 4  ;;  %s804_s28 = smov [#allocation7]   ;;  %s186_s26 = int_to_ptr.vmem [resolvable:$true] %s185_s26 }
   0xd   : > { %s1118_s23 = scalar_select %p877_p4, 1, 0 }
   0xe   : > { %s1119_s24 = scalar_select %p881_p5, 1, 0 }
   0xf   : > { %p523_p6 = pneg %p881_p5  ;;  %s201_s29 = sshll.u32 %s804_s28, 4  ;;  %s893_s29 = int_to_ptr.vmem [resolvable:$true] %s201_s29 }
  0x10   : > { %s601_s6 = scalar_lea.hbm %s1109_s1, 512 }
  0x11   : > { %p889_p7 = pnand %p523_p6, %p869_p1  ;;  %p602_p8 = scmp.ne.s32.totalorder %s1109_s1, %s601_s6 }
  0x12   : > { %p608_p12 = scmp.lt.u32.totalorder %s601_s6, %s1109_s1 }
  0x13   : > { %p603_p9 = pneg %p889_p7 }
  0x15   : > { %p604_p10 = pnand %p603_p9, %p602_p8 }
  0x17   : > { %p605_p11 = pneg %p604_p10 }
  0x19   : > { %p610_p13 = pnand %p608_p12, %p605_p11 }
  0x1b   : > { %613 = shalt.err (!%p610_p13)
}
  0x1c   : > { %s614_s11 = scalar_lea.vmem %s186_s26, 512  ;;  %p622_p6 = scmp.lt.s32.totalorder %s186_s26, %s186_s26 }
  0x1d   : > { %p615_p0 = scmp.ne.s32.totalorder %s186_s26, %s614_s11  ;;  %p623_p1 = scmp.lt.s32.totalorder %s614_s11, %s614_s11 }
  0x1f   : > { %p617_p2 = pnand %p615_p0, %p603_p9  ;;  %p624_p4 = por %p623_p1, %p622_p6 }
  0x21   : > { %p618_p3 = pneg %p617_p2 }
  0x23   : > { %p625_p5 = pnand %p624_p4, %p618_p3 }
  0x25   : > { %628 = shalt.err (!%p625_p5)
}
  0x26   : > { %s805_s12 = smov 128   ;;  %s806_s13 = smov 8  }
  0x27   : > { %526 = dma.hbm_to_vmem [thread:$0]  (!%p889_p7), %s1109_s1, 512, %s186_s26, [#allocation6], %s805_s12, %s805_s12, %s806_s13  }
  0x28   : > { %s629_s30 = scalar_lea.hbm %s1110_s2, 512 }
  0x29   : > { %p630_p1 = scmp.ne.s32.totalorder %s1110_s2, %s629_s30  ;;  %p636_p8 = scmp.lt.u32.totalorder %s629_s30, %s1110_s2 }
  0x2b   : > { %p632_p4 = pnand %p630_p1, %p603_p9 }
  0x2d   : > { %p633_p5 = pneg %p632_p4 }
  0x2f   : > { %p638_p10 = pnand %p636_p8, %p633_p5 }
  0x31   : > { %641 = shalt.err (!%p638_p10)
}
  0x32   : > { %s642_s26 = scalar_lea.vmem %s893_s29, 512  ;;  %p650_p0 = scmp.lt.s32.totalorder %s893_s29, %s893_s29 }
  0x33   : > { %p643_p11 = scmp.ne.s32.totalorder %s893_s29, %s642_s26  ;;  %p651_p2 = scmp.lt.s32.totalorder %s642_s26, %s642_s26 }
  0x35   : > { %p645_p12 = pnand %p643_p11, %p603_p9  ;;  %p652_p3 = por %p651_p2, %p650_p0 }
  0x37   : > { %p646_p13 = pneg %p645_p12 }
  0x39   : > { %p653_p6 = pnand %p652_p3, %p646_p13 }
  0x3b   : > { %656 = shalt.err (!%p653_p6)
}
  0x3c   : > { %529 = dma.hbm_to_vmem [thread:$0]  (!%p889_p7), %s1110_s2, 512, %s893_s29, [#allocation6], %s805_s12, %s805_s12, %s806_s13  }
  0x3d   : > { %s30_s11 = sadd.s32 1, %s797_s19  ;;  %s42_s27 = sadd.s32 1, %s789_s17 }
  0x3e   : > { %p31_p9 = scmp.ge.s32.totalorder %s30_s11, 3  ;;  %p49_p1 = scmp.ne.s32.totalorder %s789_s17, %s785_s16 }
  0x3f   : > { %p50_p4 = scmp.eq.s32.totalorder %s801_s20, 0  ;;  %p536_p5 = scmp.lt.s32.totalorder %s801_s20, 3 }
  0x40   : > { %s1132_s11 = smov (%p31_p9, %s30_s11), 0  ;;  %s215_s14 = sand.u32 1, %s789_s17  }
  0x41   : > { %p51_p8 = por %p50_p4, %p49_p1  ;;  %s37_s15 = ssub.s32 %s797_s19, %s1132_s11 }
  0x42   : > { %p40_p10 = scmp.eq.s32.totalorder %s37_s15, 0  ;;  %s488_s25 = sshll.u32 %s215_s14, 5 }
  0x43   : > { %s502_s28 = sshll.u32 %s797_s19, 9  ;;  %s219_s7 = scalar_lea.vmem [#allocation2], %s488_s25 }
  0x44   : > { %s961_s30 = scalar_select %p40_p10, %s789_s17, %s42_s27  }
  0x45   : > { %s966_s6 = scalar_lea.hbm %s1108_s0, %s502_s28  ;;  %s228_s8 = sshll.u32 %s219_s7, 4  ;;  %s968_s8 = int_to_ptr.vmem [resolvable:$true] %s228_s8 }
  0x46   : > { %p972_p7 = pnand %p536_p5, %p51_p8  ;;  %s976_s9 = scalar_lea.sflag [#allocation3], %s215_s14 }
  0x47   : > { %s657_s10 = scalar_lea.hbm %s966_s6, 512  ;;  %s662_s25 = scalar_lea.hbm %s1108_s0, 1536 }
  0x48   : > { %p658_p11 = scmp.ne.s32.totalorder %s966_s6, %s657_s10  ;;  %p659_p12 = pneg %p972_p7 }
  0x49   : > { %p663_p2 = scmp.lt.u32.totalorder %s966_s6, %s1108_s0  ;;  %p664_p3 = scmp.lt.u32.totalorder %s662_s25, %s657_s10 }
  0x4a   : > { %p660_p13 = pnand %p659_p12, %p658_p11  ;;  %p666_p9 = scmp.lt.u32.totalorder %s657_s10, %s966_s6 }
  0x4b   : > { %p665_p6 = por %p664_p3, %p663_p2 }
  0x4c   : > { %p661_p0 = pneg %p660_p13 }
  0x4d   : > { %p667_p1 = por %p666_p9, %p665_p6 }
  0x4f   : > { %p668_p4 = pnand %p667_p1, %p661_p0 }
  0x51   : > { %671 = shalt.err (!%p668_p4)
}
  0x52   : > { %s672_s14 = scalar_lea.vmem %s968_s8, 512  ;;  %s807_s29 = smov [#allocation2]  }
  0x53   : > { %p673_p5 = scmp.ne.s32.totalorder %s968_s8, %s672_s14  ;;  %s677_s7 = sshll.u32 %s807_s29, 4  ;;  %s678_s7 = int_to_ptr.vmem [resolvable:$false] %s677_s7 }
  0x54   : > { %s679_s27 = scalar_lea.vmem %s678_s7, 1024  ;;  %p680_p11 = scmp.lt.s32.totalorder %s968_s8, %s678_s7 }
  0x55   : > { %p675_p8 = pnand %p673_p5, %p659_p12  ;;  %p681_p13 = scmp.lt.s32.totalorder %s679_s27, %s672_s14 }
  0x57   : > { %p676_p10 = pneg %p675_p8  ;;  %p682_p2 = por %p681_p13, %p680_p11 }
  0x59   : > { %p683_p3 = pnand %p682_p2, %p676_p10 }
  0x5b   : > { %686 = shalt.err (!%p683_p3)
}
  0x5c   : > { %533 = dma.hbm_to_vmem [thread:$0]  (!%p972_p7), %s966_s6, 512, %s968_s8, %s976_s9, %s805_s12, %s805_s12, %s806_s13  }
  0x5d   : > { %p1122_p12 = scmp.ne.s32.totalorder %s1119_s24, 0 }
  0x5e   : > { %s242_s10 = sand.u32 (!%p1122_p12), 1, %s785_s16   ;;  %p1123_p0 = scmp.ne.s32.totalorder (!%p1122_p12), %s1118_s23, 0 }
  0x5f   : > { %240 = sbr.rel (%p1122_p12) target bundleno = 229 (0xe5), region = 32  ;;  %s492_s15 = sshll.u32 (!%p1122_p12), %s242_s10, 5 }
  0x60   : > { %s243_s25 = scalar_lea.sflag (!%p1122_p12), [#allocation3], %s242_s10  ;;  %s1010_s28 = scalar_lea.vmem (!%p1122_p12), [#allocation2], %s492_s15 }
  0x66   : > { %764 = dma.done.wait (%p1123_p0), %s243_s25, 512  }
  0x67   : > { %766 = vsyncadd (%p1123_p0), %s243_s25, 4294966784  ;;  %p1124_p6 = scmp.ne.s32.totalorder %s1117_s22, 0 }
  0x69   : > { %768 = dma.done.wait (%p1124_p6), [#allocation6], 1024  }
  0x6a   : > { %770 = vsyncadd (%p1124_p6), [#allocation6], 4294966272  ;;  %p495_p7 = scmp.ne.s32.totalorder %s793_s18, 0 }
  0x6b   : > { %v283_v0 = vld [vmem:[#allocation5] sm:$0xff] (!%p495_p7)  ;;  %v284_v1 = vld [vmem:[#allocation5 + $0x8] sm:$0xff] (!%p495_p7)  ;;  %v285_v2 = vld [vmem:[#allocation5 + $0x10] sm:$0xff] (!%p495_p7) }
  0x6c   : > { %282 = sbr.rel (%p495_p7) target bundleno = 115 (0x73), region = 48  ;;  %287 = vst [vmem:[#allocation8] sm:$0xff] (!%p495_p7), %v283_v0  ;;  %288 = vst [vmem:[#allocation8 + $0x8] sm:$0xff] (!%p495_p7), %v284_v1  ;;  %v286_v3 = vld [vmem:[#allocation5 + $0x18] sm:$0xff] (!%p495_p7)  ;;  %v291_v4 = vld [vmem:[#allocation7] sm:$0xff] (!%p495_p7) }
  0x6d   : > { %289 = vst [vmem:[#allocation8 + $0x10] sm:$0xff] (!%p495_p7), %v285_v2  ;;  %v292_v5 = vld [vmem:[#allocation7 + $0x8] sm:$0xff] (!%p495_p7)  ;;  %290 = vst [vmem:[#allocation8 + $0x18] sm:$0xff] (!%p495_p7), %v286_v3  ;;  %v293_v6 = vld [vmem:[#allocation7 + $0x10] sm:$0xff] (!%p495_p7) }
  0x6e   : > { %295 = vst [vmem:[#allocation9] sm:$0xff] (!%p495_p7), %v291_v4  ;;  %296 = vst [vmem:[#allocation9 + $0x8] sm:$0xff] (!%p495_p7), %v292_v5  ;;  %v294_v7 = vld [vmem:[#allocation7 + $0x18] sm:$0xff] (!%p495_p7) }
  0x6f   : > { %297 = vst [vmem:[#allocation9 + $0x10] sm:$0xff] (!%p495_p7), %v293_v6  ;;  %298 = vst [vmem:[#allocation9 + $0x18] sm:$0xff] (!%p495_p7), %v294_v7 }
  0x73 PF: > { %s299_s22 = sadd.s32 1, %s793_s18  ;;  %v305_v10 = vld [vmem:[%s1010_s28] sm:$0xff]  ;;  %v306_v11 = vld [vmem:[%s1010_s28 + $0x8] sm:$0xff]  ;;  %v307_v12 = vld [vmem:[%s1010_s28 + $0x10] sm:$0xff]  ;;  %s808_s18 = smov [#allocation8]  }
  0x74   : > { %s300_s23 = scvt.s32.f32 %s299_s22  ;;  %v308_v13 = vld [vmem:[%s1010_s28 + $0x18] sm:$0xff]  ;;  %v339_v14 = vmul.f32 %v305_v10, %v305_v10  ;;  %v340_v15 = vmul.f32 %v306_v11, %v306_v11  ;;  %v341_v16 = vmul.f32 %v307_v12, %v307_v12  ;;  %v309_v18 = vld [vmem:[#allocation8] sm:$0xff]  ;;  %v310_v20 = vld [vmem:[#allocation8 + $0x8] sm:$0xff]  ;;  %s364_s13 = sshll.u32 %s808_s18, 4  ;;  %s1032_s13 = int_to_ptr.vmem [resolvable:$true] %s364_s13 }
  0x75   : > { %v342_v17 = vmul.f32 %v308_v13, %v308_v13  ;;  %v311_v21 = vld [vmem:[#allocation8 + $0x10] sm:$0xff]  ;;  %v312_v22 = vld [vmem:[#allocation8 + $0x18] sm:$0xff]  ;;  %v331_v27 = vld [vmem:[#allocation9] sm:$0xff]  ;;  %s809_s6 = smov [#allocation9]   ;;  %p1028_p9 = scmp.eq.s32.totalorder %s483_s21, 2 }
  0x76   : > { %v301_v8 = vstv %s300_s23  ;;  %v332_v28 = vld [vmem:[#allocation9 + $0x8] sm:$0xff]  ;;  %v333_v29 = vld [vmem:[#allocation9 + $0x10] sm:$0xff]  ;;  %v334_v34 = vld [vmem:[#allocation9 + $0x18] sm:$0xff]  ;;  %s380_s8 = sshll.u32 %s809_s6, 4  ;;  %s687_s21 = scalar_lea.vmem %s1032_s13, 512  ;;  %s1034_s8 = int_to_ptr.vmem [resolvable:$true] %s380_s8 }
  0x77   : > { %599 = vrcp.f32 %v301_v8  ;;  %p688_p1 = scmp.ne.s32.totalorder %s1032_s13, %s687_s21  ;;  %p694_p8 = scmp.lt.s32.totalorder %s1032_s13, %s1032_s13 }
  0x78   : > { %p695_p10 = scmp.lt.s32.totalorder %s687_s21, %s687_s21 }
  0x79   : > { %p689_p4 = pnand %p688_p1, %p1028_p9 }
  0x7a   : > { %p696_p11 = por %p695_p10, %p694_p8 }
  0x7b   : > { %p690_p5 = pneg %p689_p4 }
  0x7d   : > { %p697_p13 = pnand %p696_p11, %p690_p5 }
  0x81   : > { %v600_v9 = vpop.eup %599 }
  0x82   : > { %503 = vpush %v600_v9 }
  0xb3   : > { %s504_s24 = spop %503 }
  0xb4   : > { %s304_s12 = ssub.f32 1.0, %s504_s24  ;;  %v318_v19 = vstv %s504_s24 }
  0xb5   : > { %v319_v23 = vmul.f32 %v318_v19, %v305_v10  ;;  %v320_v24 = vmul.f32 %v318_v19, %v306_v11  ;;  %v321_v25 = vmul.f32 %v318_v19, %v307_v12  ;;  %v322_v26 = vmul.f32 %v318_v19, %v308_v13 }
  0xb6   : > { %v313_v30 = vstv %s304_s12  ;;  %v343_v31 = vmul.f32 %v339_v14, %v318_v19  ;;  %v344_v32 = vmul.f32 %v340_v15, %v318_v19  ;;  %v345_v33 = vmul.f32 %v341_v16, %v318_v19 }
  0xb7   : > { %v346_v35 = vmul.f32 %v342_v17, %v318_v19  ;;  %v314_v36 = vmul.f32 %v313_v30, %v309_v18  ;;  %v315_v37 = vmul.f32 %v313_v30, %v310_v20  ;;  %v316_v38 = vmul.f32 %v313_v30, %v311_v21 }
  0xb8   : > { %v317_v39 = vmul.f32 %v313_v30, %v312_v22  ;;  %v335_v40 = vmul.f32 %v331_v27, %v313_v30  ;;  %v336_v41 = vmul.f32 %v332_v28, %v313_v30  ;;  %v337_v42 = vmul.f32 %v333_v29, %v313_v30 }
  0xb9   : > { %v323_v43 = vadd.f32 %v319_v23, %v314_v36  ;;  %v324_v44 = vadd.f32 %v320_v24, %v315_v37  ;;  %v325_v45 = vadd.f32 %v321_v25, %v316_v38  ;;  %v338_v46 = vmul.f32 %v334_v34, %v313_v30 }
  0xba   : > { %v326_v47 = vadd.f32 %v322_v26, %v317_v39  ;;  %v347_v48 = vadd.f32 %v343_v31, %v335_v40  ;;  %v348_v49 = vadd.f32 %v344_v32, %v336_v41  ;;  %v349_v50 = vadd.f32 %v345_v33, %v337_v42 }
  0xbb   : > { %327 = vst [vmem:[#allocation8] sm:$0xff] %v323_v43  ;;  %328 = vst [vmem:[#allocation8 + $0x8] sm:$0xff] %v324_v44  ;;  %v350_v51 = vadd.f32 %v346_v35, %v338_v46 }
  0xbc   : > { %329 = vst [vmem:[#allocation8 + $0x10] sm:$0xff] %v325_v45  ;;  %330 = vst [vmem:[#allocation8 + $0x18] sm:$0xff] %v326_v47 }
  0xbd   : > { %351 = vst [vmem:[#allocation9] sm:$0xff] %v347_v48  ;;  %352 = vst [vmem:[#allocation9 + $0x8] sm:$0xff] %v348_v49 }
  0xbe   : > { %353 = vst [vmem:[#allocation9 + $0x10] sm:$0xff] %v349_v50 }
  0xbf   : > { %700 = shalt.err (!%p697_p13)
}
  0xc0   : > { %s701_s14 = scalar_lea.hbm %s1111_s3, 512 }
  0xc1   : > { %p702_p2 = scmp.ne.s32.totalorder %s1111_s3, %s701_s14  ;;  %p707_p0 = scmp.lt.u32.totalorder %s701_s14, %s1111_s3 }
  0xc3   : > { %p703_p3 = pnand %p702_p2, %p1028_p9 }
  0xc5   : > { %p704_p12 = pneg %p703_p3 }
  0xc7   : > { %p709_p6 = pnand %p707_p0, %p704_p12 }
  0xc9   : > { %712 = shalt.err (!%p709_p6)
}
  0xca   : > { %s810_s15 = smov 128   ;;  %s811_s25 = smov 8   ;;  %354 = vst [vmem:[#allocation9 + $0x18] sm:$0xff] %v350_v51 }
  0xcb   : > { %516 = dma.vmem_to_hbm [thread:$0]  (%p1028_p9), %s1032_s13, 512, %s1111_s3, [#allocation4], %s810_s15, %s810_s15, %s811_s25  }
  0xcc   : > { %s713_s23 = scalar_lea.vmem %s1034_s8, 512  ;;  %p720_p5 = scmp.lt.s32.totalorder %s1034_s8, %s1034_s8 }
  0xcd   : > { %p714_p7 = scmp.ne.s32.totalorder %s1034_s8, %s713_s23  ;;  %p721_p8 = scmp.lt.s32.totalorder %s713_s23, %s713_s23 }
  0xcf   : > { %p715_p1 = pnand %p714_p7, %p1028_p9  ;;  %p722_p10 = por %p721_p8, %p720_p5 }
  0xd1   : > { %p716_p4 = pneg %p715_p1 }
  0xd3   : > { %p723_p11 = pnand %p722_p10, %p716_p4 }
  0xd5   : > { %726 = shalt.err (!%p723_p11)
}
  0xd6   : > { %s727_s18 = scalar_lea.hbm %s1112_s4, 512 }
  0xd7   : > { %p728_p13 = scmp.ne.s32.totalorder %s1112_s4, %s727_s18  ;;  %p733_p12 = scmp.lt.u32.totalorder %s727_s18, %s1112_s4 }
  0xd9   : > { %p729_p2 = pnand %p728_p13, %p1028_p9 }
  0xdb   : > { %p730_p3 = pneg %p729_p2 }
  0xdd   : > { %p735_p0 = pnand %p733_p12, %p730_p3 }
  0xdf   : > { %738 = shalt.err (!%p735_p0)
}
  0xe0   : > { %518 = dma.vmem_to_hbm [thread:$0]  (%p1028_p9), %s1034_s8, 512, %s1112_s4, [#allocation10], %s810_s15, %s810_s15, %s811_s25  }
  0xe1   : > { %772 = dma.done.wait (%p1028_p9), [#allocation4], 512  }
  0xe2   : > { %774 = vsyncadd (%p1028_p9), [#allocation4], 4294966784 }
  0xe3   : > { %776 = dma.done.wait (%p1028_p9), [#allocation10], 512  }
  0xe4   : > { %778 = vsyncadd (%p1028_p9), [#allocation10], 4294966784 }
  0xe5 PF: > { %s21_s20 = sadd.s32 1, %s801_s20   ;;  %s1126_s15 = smov %s785_s16 }
  0xe6   : > { %p18_p6 = scmp.ge.s32.totalorder %s21_s20, 5   ;;  %s1127_s16 = smov %s789_s17 }
  0xe7   : > { %s1128_s17 = smov %s961_s30  ;;  %s1129_s18 = smov %s797_s19 }
  0xe8   : > { %s1130_s19 = smov %s1132_s11  ;;  %20 = sbr.rel (!%p18_p6) target bundleno = 7 (0x7), region = 93 }
  0xef   :  { %400 = vsyncpa [#allocation3], 1 }
  0xf0   :  { %402 = vsyncpa [#allocation3 + $0x1], 1 }
  0xf1   :  { %403 = vsyncpa [#allocation6], 1 }
  0xf2   :  { %404 = vsyncpa [#allocation4], 1 }
  0xf3   :  { %406 = vsyncpa [#allocation4 + $0x1], 1 }
  0xf4   :  { %407 = vsyncpa [#allocation10], 1 }

</bundles_post_ra>
